<compile_context>
chip_gen: v5e
topology: v5e:2x2
jax: 0.10.0
libtpu: 0.0.40
codegen_flags: <defaults>
</compile_context>

<pallas_src>
import math

import jax
import jax.numpy as jnp
from jax import lax
from jax.experimental import pallas as pl
from jax.experimental.pallas import tpu as pltpu


def _round_up(x, m):
    return ((x + m - 1) // m) * m


def _vmem_limit_bytes(est):
    est = int(est * 1.5) + (4 << 20)
    return max(16 << 20, min(est, 110 << 20))


# ----------------------------------------------------------------------------
# Prefill kernel: all layers fused, sequence chunked over a grid axis
# ----------------------------------------------------------------------------
def _make_prefill_kernel(depth, TN, Dp, n_real):
    last_local = (n_real - 1) % TN        # row of the last real token inside the last chunk
    needs_mask = (n_real % TN) != 0       # padded rows only exist in the last chunk

    def kernel(x_ref, w_ref, g_ref, h0_ref, y_ref, ca_ref, ch_ref, h_state):
        c = pl.program_id(1)

        # (Re)seed the per-layer hidden-state carry at the first chunk of every batch row.
        @pl.when(c == 0)
        def _():
            h_state[...] = h0_ref[0]

        acc = x_ref[0].astype(jnp.float32)                      # (TN, Dp) residual stream

        if needs_mask:
            idx = c * TN + lax.broadcasted_iota(jnp.int32, (TN, 1), 0)
            valid = idx < n_real                                # (TN, 1)

        a_last_rows = []
        for l in range(depth):                                  # static unroll over layers
            # RMSNorm: F.normalize(x, -1) * sqrt(D) * gamma  (sqrt(D) folded into g).
            ssq = jnp.sum(acc * acc, axis=-1, keepdims=True)
            xn = acc * lax.rsqrt(jnp.maximum(ssq, 1e-24)) * g_ref[l:l + 1, :]

            # q / kv / a projection: bf16 operands on the MXU, f32 accumulate.  Column
            # groups are 128-lane aligned (each group starts at a multiple of Dp).
            proj = jnp.dot(xn.astype(jnp.bfloat16), w_ref[l],
                           preferred_element_type=jnp.float32)  # (TN, 3*Dp)
            q = proj[:, 0:Dp]
            kv = proj[:, Dp:2 * Dp]
            a = jax.nn.sigmoid(proj[:, 2 * Dp:3 * Dp])

            # Row of the last *real* token (stored only at the last chunk, below).
            a_last_rows.append(a[last_local:last_local + 1, :])

            if needs_mask:                                      # padded rows act as identity
                a = jnp.where(valid, a, 1.0)
                kv = jnp.where(valid, kv, 0.0)

            # Hillis-Steele parallel scan of h_t = a_t * h_{t-1} + kv_t over the chunk:
            # composes affine maps (a1,b1),(a2,b2) -> (a2*a1, a2*b1 + b2) with log2(TN)
            # doubling steps of full-(TN, Dp) work instead of TN serial single-sublane ops.
            A, Bc = a, kv
            d = 1
            while d < TN:
                a_prev = jnp.concatenate(
                    [jnp.ones((d, Dp), jnp.float32), A[:TN - d]], axis=0)
                b_prev = jnp.concatenate(
                    [jnp.zeros((d, Dp), jnp.float32), Bc[:TN - d]], axis=0)
                Bc = A * b_prev + Bc
                A = A * a_prev
                d *= 2
            h_prev = h_state[l:l + 1, :]                        # carry from previous chunk
            h_all = A * h_prev + Bc                             # (TN, Dp)
            h_state[l:l + 1, :] = h_all[TN - 1:TN, :]           # exact (padding = identity)

            acc = acc + q * h_all                               # block residual, in-register

        # One lane/sublane-dense store of the whole chunk.
        y_ref[0] = acc.astype(y_ref.dtype)

        # Per-layer cache = (a_last, h_last); only the last chunk's values survive,
        # so gate the stores and write one dense (depth, Dp) tile each.
        @pl.when(c == pl.num_programs(1) - 1)
        def _():
            ca_ref[0] = jnp.concatenate(a_last_rows, axis=0)    # (depth, Dp)
            ch_ref[0] = h_state[...]

    return kernel


def _gateloop_prefill(x, w_pad, g_pad, h0_pad, *, max_tile=256):
    """x: [B, N, D]; w_pad: [depth, Dp, 3*Dp] bf16; g_pad: [depth, Dp] f32 (gamma*sqrt(D));
    h0_pad: [B, depth, Dp] f32.  Returns (y [B,N,D], a_last [B,depth,D], h_last [B,depth,D])."""
    B, N, D = x.shape
    depth, Dp, _ = w_pad.shape

    # Balanced chunking: as few chunks as possible with tiles capped at `max_tile`
    # (256 fills the 2x256 MXU M dim on v6e/v7x; pass max_tile=128 on v5e).
    n_chunks = max(1, -(-N // max_tile))
    TN = _round_up(-(-N // n_chunks), 8)
    Np = n_chunks * TN

    x_pad = jnp.pad(x, ((0, 0), (0, Np - N), (0, Dp - D)))
    itm = jnp.dtype(x.dtype).itemsize

    vmem_est = (w_pad.size * 2 + g_pad.size * 4
                + 2 * TN * Dp * itm * 2          # x / y blocks (double-buffered)
                + 6 * depth * Dp * 4             # h0 / ca / ch blocks
                + depth * Dp * 4                 # h carry scratch
                + 8 * TN * Dp * 4)               # scan temporaries / spill headroom

    flops = 2 * B * Np * depth * Dp * 3 * Dp + 16 * B * Np * depth * Dp
    transcendentals = 2 * B * Np * depth * Dp
    bytes_accessed = (2 * x_pad.size * itm + w_pad.size * 2 + g_pad.size * 4
                      + h0_pad.size * 4 + 2 * B * depth * Dp * 4)

    y, ca, ch = pl.pallas_call(
        _make_prefill_kernel(depth, TN, Dp, N),
        out_shape=(
            jax.ShapeDtypeStruct((B, Np, Dp), x.dtype),
            jax.ShapeDtypeStruct((B, depth, Dp), jnp.float32),
            jax.ShapeDtypeStruct((B, depth, Dp), jnp.float32),
        ),
        grid=(B, n_chunks),
        in_specs=[
            pl.BlockSpec((1, TN, Dp), lambda b, c: (b, c, 0)),      # x chunk (pipelined)
            pl.BlockSpec(memory_space=pltpu.MemorySpace.VMEM),      # W: whole, single copy
            pl.BlockSpec(memory_space=pltpu.MemorySpace.VMEM),      # gamma*sqrt(D): whole
            pl.BlockSpec((1, depth, Dp), lambda b, c: (b, 0, 0)),   # h0 per batch row
        ],
        out_specs=(
            pl.BlockSpec((1, TN, Dp), lambda b, c: (b, c, 0)),      # y = residual stream out
            pl.BlockSpec((1, depth, Dp), lambda b, c: (b, 0, 0)),   # cache: a_last per layer
            pl.BlockSpec((1, depth, Dp), lambda b, c: (b, 0, 0)),   # cache: h_last per layer
        ),
        scratch_shapes=[pltpu.VMEM((depth, Dp), jnp.float32)],      # per-layer h carry
        compiler_params=pltpu.CompilerParams(
            # batch "parallel" for megacore sharding (keep B >= 2 per chip on v7x);
            # the chunk axis carries h, so it is "arbitrary".
            dimension_semantics=("parallel", "arbitrary"),
            vmem_limit_bytes=_vmem_limit_bytes(vmem_est)),
        cost_estimate=pl.CostEstimate(flops=int(flops),
                                      transcendentals=int(transcendentals),
                                      bytes_accessed=int(bytes_accessed)),
    )(x_pad, w_pad, g_pad, h0_pad)

    return y[:, :N, :D], ca[:, :, :D], ch[:, :, :D]


# ----------------------------------------------------------------------------
# Decode kernel (N == 1): batch blocked into the matmul M dimension
# ----------------------------------------------------------------------------
def _make_decode_kernel(depth, Dp):
    def kernel(x_ref, w_ref, g_ref, h0_ref, y_ref, ca_ref, ch_ref):
        acc = x_ref[...].astype(jnp.float32)                    # (TB, Dp)
        for l in range(depth):
            ssq = jnp.sum(acc * acc, axis=-1, keepdims=True)
            xn = acc * lax.rsqrt(jnp.maximum(ssq, 1e-24)) * g_ref[l:l + 1, :]
            proj = jnp.dot(xn.astype(jnp.bfloat16), w_ref[l],
                           preferred_element_type=jnp.float32)  # (TB, 3*Dp)
            q = proj[:, 0:Dp]
            kv = proj[:, Dp:2 * Dp]
            a = jax.nn.sigmoid(proj[:, 2 * Dp:3 * Dp])
            h = a * h0_ref[:, l, :] + kv                        # single recurrence step
            acc = acc + q * h
            ca_ref[:, l, :] = a
            ch_ref[:, l, :] = h
        y_ref[...] = acc.astype(y_ref.dtype)
    return kernel


def _gateloop_decode(x, w_pad, g_pad, h0_pad):
    """Single-token path: x [B, 1, D].  Batch is blocked into the matmul M dimension."""
    B, _, D = x.shape
    depth, Dp, _ = w_pad.shape
    TB = min(128, _round_up(B, 8))
    Bp = _round_up(B, TB)

    x2 = jnp.pad(x.reshape(B, D), ((0, Bp - B), (0, Dp - D)))
    h0 = jnp.pad(h0_pad, ((0, Bp - B), (0, 0), (0, 0)))

    vmem_est = (w_pad.size * 2 + g_pad.size * 4
                + 4 * TB * Dp * 4 + 6 * TB * depth * Dp * 4 + 4 * TB * Dp * 4)

    y2, ca, ch = pl.pallas_call(
        _make_decode_kernel(depth, Dp),
        out_shape=(
            jax.ShapeDtypeStruct((Bp, Dp), x.dtype),
            jax.ShapeDtypeStruct((Bp, depth, Dp), jnp.float32),
            jax.ShapeDtypeStruct((Bp, depth, Dp), jnp.float32),
        ),
        grid=(Bp // TB,),
        in_specs=[
            pl.BlockSpec((TB, Dp), lambda i: (i, 0)),
            pl.BlockSpec(memory_space=pltpu.MemorySpace.VMEM),
            pl.BlockSpec(memory_space=pltpu.MemorySpace.VMEM),
            pl.BlockSpec((TB, depth, Dp), lambda i: (i, 0, 0)),
        ],
        out_specs=(
            pl.BlockSpec((TB, Dp), lambda i: (i, 0)),
            pl.BlockSpec((TB, depth, Dp), lambda i: (i, 0, 0)),
            pl.BlockSpec((TB, depth, Dp), lambda i: (i, 0, 0)),
        ),
        compiler_params=pltpu.CompilerParams(
            dimension_semantics=("parallel",),
            vmem_limit_bytes=_vmem_limit_bytes(vmem_est)),
    )(x2, w_pad, g_pad, h0)

    y = y2[:B, :D].reshape(B, 1, D)
    return y, ca[:B, :, :D], ch[:B, :, :D]


# ----------------------------------------------------------------------------
# GateLoopBlock wrapper (cache plumbing identical to the PyTorch module)
# ----------------------------------------------------------------------------
class GateLoopBlockPallas:
    def __init__(self, dim, *, depth, key, max_seq_tile=256):
        self.dim = dim
        self.depth = depth
        self.dim_p = _round_up(dim, 128)       # lane-aligned feature dim
        self.max_seq_tile = max_seq_tile       # 256 for v6e/v7x; use 128 on v5e

        keys = jax.random.split(key, depth)
        bound = 1.0 / math.sqrt(dim)           # torch nn.Linear default init bound
        w = jnp.stack([jax.random.uniform(k, (dim, 3 * dim), jnp.float32, -bound, bound)
                       for k in keys])                         # (depth, D, 3D)
        gamma = jnp.ones((depth, dim), jnp.float32)            # RMSNorm gamma init

        # Unpadded copies (reference / inspection).
        self.w_all = w.astype(jnp.bfloat16)
        self.gamma_all = gamma

        # Kernel-side parameters: D padded to a multiple of 128; q/kv/a weight column
        # groups each start on a 128-lane boundary; sqrt(D) pre-folded into gamma.
        Dp = self.dim_p
        w_pad = jnp.zeros((depth, Dp, 3 * Dp), jnp.float32)
        for gi in range(3):
            w_pad = w_pad.at[:, :dim, gi * Dp:gi * Dp + dim].set(
                w[:, :, gi * dim:(gi + 1) * dim])
        self.w_pad = w_pad.astype(jnp.bfloat16)
        self.g_pad = jnp.pad(gamma * jnp.float32(math.sqrt(dim)), ((0, 0), (0, Dp - dim)))

    def __call__(self, x, cache=None):
        if x.size == 0:
            return x, None
        received_cache = cache is not None
        if received_cache:
            prev, x = x[:, :-1], x[:, -1:]
        B, N, D = x.shape
        depth, Dp = self.depth, self.dim_p

        # Seeding h0 = cached h_last is equivalent to the original's "prepend (a_last,
        # h_last) to the sequence and drop the first scan output"; a_last is not needed.
        if received_cache:
            cache = list(cache)
            h0_layers = []
            for i in range(depth):
                if i < len(cache) and cache[i] is not None:
                    h0_layers.append(cache[i][1].reshape(B, D).astype(jnp.float32))
                else:
                    h0_layers.append(jnp.zeros((B, D), jnp.float32))
            h0 = jnp.stack(h0_layers, axis=1)                  # (B, depth, D)
        else:
            h0 = jnp.zeros((B, depth, D), jnp.float32)
        h0 = jnp.pad(h0, ((0, 0), (0, 0), (0, Dp - D)))

        if N == 1:
            y, ca, ch = _gateloop_decode(x, self.w_pad, self.g_pad, h0)
        else:
            y, ca, ch = _gateloop_prefill(x, self.w_pad, self.g_pad, h0,
                                          max_tile=self.max_seq_tile)

        new_caches = [(ca[:, i:i + 1, :], ch[:, i:i + 1, :]) for i in range(depth)]
        if received_cache:
            y = jnp.concatenate([prev, y.astype(prev.dtype)], axis=-2)
        return y, new_caches


# ----------------------------------------------------------------------------
# Pure-JAX reference (same bf16-matmul / rsqrt numerics) for a sanity check
# ----------------------------------------------------------------------------
def _ref_forward(x, w_all, gamma_all):
    depth, D, _ = w_all.shape
    x = x.astype(jnp.float32)
    scale = jnp.float32(math.sqrt(D))
    for l in range(depth):
        ssq = jnp.sum(x * x, axis=-1, keepdims=True)
        xn = x * lax.rsqrt(jnp.maximum(ssq, 1e-24)) * (gamma_all[l] * scale)
        proj = jnp.einsum('bnd,de->bne', xn.astype(jnp.bfloat16), w_all[l],
                          preferred_element_type=jnp.float32)
        q, kv, a = proj[..., :D], proj[..., D:2 * D], jax.nn.sigmoid(proj[..., 2 * D:])

        def step(h, inp):
            a_t, kv_t = inp
            h = a_t * h + kv_t
            return h, h

        _, hs = lax.scan(step, jnp.zeros((x.shape[0], D), jnp.float32),
                         (jnp.swapaxes(a, 0, 1), jnp.swapaxes(kv, 0, 1)))
        hs = jnp.swapaxes(hs, 0, 1)
        x = x + q * hs
    return x


if __name__ == "__main__":
    key = jax.random.PRNGKey(0)
    B, N, D, depth = 2, 8, 32, 2
    k_x, k_p = jax.random.split(key)
    x = jax.random.normal(k_x, (B, N, D), jnp.float32)

    block = GateLoopBlockPallas(D, depth=depth, key=k_p)

    # Full forward (prefill kernel).
    y, caches = block(x)
    y = jax.block_until_ready(y)
    y_ref = _ref_forward(x, block.w_all, block.gamma_all)
    assert y.shape == (B, N, D) and len(caches) == depth
    assert jnp.allclose(y, y_ref, rtol=2e-3, atol=2e-3), "mismatch vs pure-JAX reference"

    # Ragged sequence (exercises the in-kernel padding mask: N=7 padded to the 8-row tile).
    y7, _ = block(x[:, :7])
    y7 = jax.block_until_ready(y7)
    y7_ref = _ref_forward(x[:, :7], block.w_all, block.gamma_all)
    assert jnp.allclose(y7, y7_ref, rtol=2e-3, atol=2e-3), "ragged-N mismatch"

    # Incremental decode: cache from the first N-1 tokens, then the last token through the
    # batch-blocked decode kernel; must reproduce the full prefill's last position.
    _, pre_caches = block(x[:, :-1])
    y_inc, _ = block(x, cache=pre_caches)
    y_inc = jax.block_until_ready(y_inc)
    assert jnp.allclose(y_inc[:, -1], y[:, -1], rtol=2e-3, atol=2e-3), "cache path mismatch"

    print("KERNEL_OK")
</pallas_src>

<mosaic_0001>
module attributes {stable_mosaic.version = 11 : i64} {
  func.func @kernel(%arg0: i32, %arg1: i32, %arg2: memref<1x8x128xf32, #tpu.memory_space<vmem>>, %arg3: memref<2x128x384xbf16, #tpu.memory_space<vmem>>, %arg4: memref<2x128xf32, #tpu.memory_space<vmem>>, %arg5: memref<1x2x128xf32, #tpu.memory_space<vmem>>, %arg6: memref<1x8x128xf32, #tpu.memory_space<vmem>>, %arg7: memref<1x2x128xf32, #tpu.memory_space<vmem>>, %arg8: memref<1x2x128xf32, #tpu.memory_space<vmem>>, %arg9: memref<2x128xf32, #tpu.memory_space<vmem>>) attributes {dimension_semantics = [#tpu.dimension_semantics<parallel>, #tpu.dimension_semantics<arbitrary>], iteration_bounds = array<i64: 2, 1>, scalar_prefetch = 0 : i64, scratch_operands = 1 : i64, tpu.core_type = #tpu.core_type<tc>, window_params = [{transform_indices = @transform_0, window_bounds = array<i64: 1, 8, 128>}, {pipeline_mode = #tpu.pipeline_mode<synchronous>, transform_indices = @transform_1, window_bounds = array<i64: 2, 128, 384>}, {pipeline_mode = #tpu.pipeline_mode<synchronous>, transform_indices = @transform_2, window_bounds = array<i64: 2, 128>}, {transform_indices = @transform_3, window_bounds = array<i64: 1, 2, 128>}, {transform_indices = @transform_4, window_bounds = array<i64: 1, 8, 128>}, {transform_indices = @transform_5, window_bounds = array<i64: 1, 2, 128>}, {transform_indices = @transform_6, window_bounds = array<i64: 1, 2, 128>}]} {
    %c0_i32 = arith.constant 0 : i32
    %0 = arith.cmpi eq, %arg1, %c0_i32 : i32
    %1 = arith.extui %0 : i1 to i32
    %c0_i32_0 = arith.constant 0 : i32
    %2 = arith.cmpi ne, %1, %c0_i32_0 : i32
    scf.if %2 {
      %c0_44 = arith.constant 0 : index
      %c0_45 = arith.constant 0 : index
      %c0_46 = arith.constant 0 : index
      %129 = vector.load %arg5[%c0_44, %c0_45, %c0_46] : memref<1x2x128xf32, #tpu.memory_space<vmem>>, vector<1x2x128xf32>
      %130 = vector.shape_cast %129 : vector<1x2x128xf32> to vector<2x128xf32>
      %c0_47 = arith.constant 0 : index
      %c0_48 = arith.constant 0 : index
      %131 = vector.load %arg9[%c0_47, %c0_48] : memref<2x128xf32, #tpu.memory_space<vmem>>, vector<2x128xf32>
      tpu.vector_store %arg9[%c0_47, %c0_48], %130 {strides = array<i32>} : memref<2x128xf32, #tpu.memory_space<vmem>>, vector<2x128xf32>,
    } else {
    }
    %c0 = arith.constant 0 : index
    %c0_1 = arith.constant 0 : index
    %c0_2 = arith.constant 0 : index
    %3 = vector.load %arg2[%c0, %c0_1, %c0_2] : memref<1x8x128xf32, #tpu.memory_space<vmem>>, vector<1x8x128xf32>
    %4 = vector.shape_cast %3 : vector<1x8x128xf32> to vector<8x128xf32>
    %5 = arith.mulf %4, %4 : vector<8x128xf32>
    %cst = arith.constant dense<0.000000e+00> : vector<8xf32>
    %6 = vector.multi_reduction <add>, %5, %cst [1] : vector<8x128xf32> to vector<8xf32>
    %7 = vector.shape_cast %6 : vector<8xf32> to vector<8x1xf32>
    %cst_3 = arith.constant 1.000000e-24 : f32
    %8 = vector.broadcast %cst_3 : f32 to vector<8x1xf32>
    %9 = arith.maximumf %7, %8 : vector<8x1xf32>
    %10 = math.rsqrt %9 : vector<8x1xf32>
    %11 = vector.broadcast %10 : vector<8x1xf32> to vector<8x128xf32>
    %12 = arith.mulf %4, %11 : vector<8x128xf32>
    %c0_4 = arith.constant 0 : index
    %c0_5 = arith.constant 0 : index
    %13 = vector.load %arg4[%c0_4, %c0_5] : memref<2x128xf32, #tpu.memory_space<vmem>>, vector<1x128xf32>
    %14 = vector.broadcast %13 : vector<1x128xf32> to vector<8x128xf32>
    %15 = arith.mulf %12, %14 : vector<8x128xf32>
    %16 = arith.truncf %15 : vector<8x128xf32> to vector<8x128xbf16>
    %c0_6 = arith.constant 0 : index
    %c0_7 = arith.constant 0 : index
    %c0_8 = arith.constant 0 : index
    %17 = vector.load %arg3[%c0_6, %c0_7, %c0_8] : memref<2x128x384xbf16, #tpu.memory_space<vmem>>, vector<1x128x384xbf16>
    %18 = vector.shape_cast %17 : vector<1x128x384xbf16> to vector<128x384xbf16>
    %cst_9 = arith.constant dense<0.000000e+00> : vector<8x384xf32>
    %19 = tpu.matmul %16, %18, %cst_9 {dimension_numbers = #tpu.dot_dimension_numbers<[1], [0], [0], [1], [0, 0, 1, 1], [], []>} : vector<8x128xbf16>, vector<128x384xbf16>, vector<8x384xf32> -> vector<8x384xf32>
    %20 = vector.extract_strided_slice %19 {offsets = [0, 0], sizes = [8, 128], strides = [1, 1]} : vector<8x384xf32> to vector<8x128xf32>
    %21 = vector.extract_strided_slice %19 {offsets = [0, 128], sizes = [8, 128], strides = [1, 1]} : vector<8x384xf32> to vector<8x128xf32>
    %22 = vector.extract_strided_slice %19 {offsets = [0, 256], sizes = [8, 128], strides = [1, 1]} : vector<8x384xf32> to vector<8x128xf32>
    %23 = arith.negf %22 : vector<8x128xf32>
    %24 = math.exp %23 : vector<8x128xf32>
    %cst_10 = arith.constant 1.000000e+00 : f32
    %25 = vector.broadcast %cst_10 : f32 to vector<8x128xf32>
    %26 = arith.addf %25, %24 : vector<8x128xf32>
    %27 = arith.divf %25, %26 : vector<8x128xf32>
    %28 = vector.extract_strided_slice %27 {offsets = [7, 0], sizes = [1, 128], strides = [1, 1]} : vector<8x128xf32> to vector<1x128xf32>
    %cst_11 = arith.constant 1.000000e+00 : f32
    %29 = vector.broadcast %cst_11 : f32 to vector<1x128xf32>
    %30 = vector.extract_strided_slice %27 {offsets = [0, 0], sizes = [7, 128], strides = [1, 1]} : vector<8x128xf32> to vector<7x128xf32>
    %31 = tpu.concatenate %29, %30 in 0 : vector<1x128xf32>, vector<7x128xf32> -> vector<8x128xf32>
    %cst_12 = arith.constant 0.000000e+00 : f32
    %32 = vector.broadcast %cst_12 : f32 to vector<1x128xf32>
    %33 = vector.extract_strided_slice %21 {offsets = [0, 0], sizes = [7, 128], strides = [1, 1]} : vector<8x128xf32> to vector<7x128xf32>
    %34 = tpu.concatenate %32, %33 in 0 : vector<1x128xf32>, vector<7x128xf32> -> vector<8x128xf32>
    %35 = arith.mulf %27, %34 : vector<8x128xf32>
    %36 = arith.addf %35, %21 : vector<8x128xf32>
    %37 = arith.mulf %27, %31 : vector<8x128xf32>
    %cst_13 = arith.constant 1.000000e+00 : f32
    %38 = vector.broadcast %cst_13 : f32 to vector<2x128xf32>
    %39 = vector.extract_strided_slice %37 {offsets = [0, 0], sizes = [6, 128], strides = [1, 1]} : vector<8x128xf32> to vector<6x128xf32>
    %40 = tpu.concatenate %38, %39 in 0 : vector<2x128xf32>, vector<6x128xf32> -> vector<8x128xf32>
    %cst_14 = arith.constant 0.000000e+00 : f32
    %41 = vector.broadcast %cst_14 : f32 to vector<2x128xf32>
    %42 = vector.extract_strided_slice %36 {offsets = [0, 0], sizes = [6, 128], strides = [1, 1]} : vector<8x128xf32> to vector<6x128xf32>
    %43 = tpu.concatenate %41, %42 in 0 : vector<2x128xf32>, vector<6x128xf32> -> vector<8x128xf32>
    %44 = arith.mulf %37, %43 : vector<8x128xf32>
    %45 = arith.addf %44, %36 : vector<8x128xf32>
    %46 = arith.mulf %37, %40 : vector<8x128xf32>
    %cst_15 = arith.constant 1.000000e+00 : f32
    %47 = vector.broadcast %cst_15 : f32 to vector<4x128xf32>
    %48 = vector.extract_strided_slice %46 {offsets = [0, 0], sizes = [4, 128], strides = [1, 1]} : vector<8x128xf32> to vector<4x128xf32>
    %49 = tpu.concatenate %47, %48 in 0 : vector<4x128xf32>, vector<4x128xf32> -> vector<8x128xf32>
    %cst_16 = arith.constant 0.000000e+00 : f32
    %50 = vector.broadcast %cst_16 : f32 to vector<4x128xf32>
    %51 = vector.extract_strided_slice %45 {offsets = [0, 0], sizes = [4, 128], strides = [1, 1]} : vector<8x128xf32> to vector<4x128xf32>
    %52 = tpu.concatenate %50, %51 in 0 : vector<4x128xf32>, vector<4x128xf32> -> vector<8x128xf32>
    %53 = arith.mulf %46, %52 : vector<8x128xf32>
    %54 = arith.addf %53, %45 : vector<8x128xf32>
    %55 = arith.mulf %46, %49 : vector<8x128xf32>
    %c0_17 = arith.constant 0 : index
    %c0_18 = arith.constant 0 : index
    %56 = vector.load %arg9[%c0_17, %c0_18] : memref<2x128xf32, #tpu.memory_space<vmem>>, vector<1x128xf32>
    %57 = vector.broadcast %56 : vector<1x128xf32> to vector<8x128xf32>
    %58 = arith.mulf %55, %57 : vector<8x128xf32>
    %59 = arith.addf %58, %54 : vector<8x128xf32>
    %60 = vector.extract_strided_slice %59 {offsets = [7, 0], sizes = [1, 128], strides = [1, 1]} : vector<8x128xf32> to vector<1x128xf32>
    %c0_19 = arith.constant 0 : index
    %c0_20 = arith.constant 0 : index
    %61 = vector.load %arg9[%c0_19, %c0_20] : memref<2x128xf32, #tpu.memory_space<vmem>>, vector<1x128xf32>
    tpu.vector_store %arg9[%c0_19, %c0_20], %60 {strides = array<i32>} : memref<2x128xf32, #tpu.memory_space<vmem>>, vector<1x128xf32>,
    %62 = arith.mulf %20, %59 : vector<8x128xf32>
    %63 = arith.addf %4, %62 : vector<8x128xf32>
    %64 = arith.mulf %63, %63 : vector<8x128xf32>
    %cst_21 = arith.constant dense<0.000000e+00> : vector<8xf32>
    %65 = vector.multi_reduction <add>, %64, %cst_21 [1] : vector<8x128xf32> to vector<8xf32>
    %66 = vector.shape_cast %65 : vector<8xf32> to vector<8x1xf32>
    %cst_22 = arith.constant 1.000000e-24 : f32
    %67 = vector.broadcast %cst_22 : f32 to vector<8x1xf32>
    %68 = arith.maximumf %66, %67 : vector<8x1xf32>
    %69 = math.rsqrt %68 : vector<8x1xf32>
    %70 = vector.broadcast %69 : vector<8x1xf32> to vector<8x128xf32>
    %71 = arith.mulf %63, %70 : vector<8x128xf32>
    %c1 = arith.constant 1 : index
    %c0_23 = arith.constant 0 : index
    %72 = vector.load %arg4[%c1, %c0_23] : memref<2x128xf32, #tpu.memory_space<vmem>>, vector<1x128xf32>
    %73 = vector.broadcast %72 : vector<1x128xf32> to vector<8x128xf32>
    %74 = arith.mulf %71, %73 : vector<8x128xf32>
    %75 = arith.truncf %74 : vector<8x128xf32> to vector<8x128xbf16>
    %c1_24 = arith.constant 1 : index
    %c0_25 = arith.constant 0 : index
    %c0_26 = arith.constant 0 : index
    %76 = vector.load %arg3[%c1_24, %c0_25, %c0_26] : memref<2x128x384xbf16, #tpu.memory_space<vmem>>, vector<1x128x384xbf16>
    %77 = vector.shape_cast %76 : vector<1x128x384xbf16> to vector<128x384xbf16>
    %cst_27 = arith.constant dense<0.000000e+00> : vector<8x384xf32>
    %78 = tpu.matmul %75, %77, %cst_27 {dimension_numbers = #tpu.dot_dimension_numbers<[1], [0], [0], [1], [0, 0, 1, 1], [], []>} : vector<8x128xbf16>, vector<128x384xbf16>, vector<8x384xf32> -> vector<8x384xf32>
    %79 = vector.extract_strided_slice %78 {offsets = [0, 0], sizes = [8, 128], strides = [1, 1]} : vector<8x384xf32> to vector<8x128xf32>
    %80 = vector.extract_strided_slice %78 {offsets = [0, 128], sizes = [8, 128], strides = [1, 1]} : vector<8x384xf32> to vector<8x128xf32>
    %81 = vector.extract_strided_slice %78 {offsets = [0, 256], sizes = [8, 128], strides = [1, 1]} : vector<8x384xf32> to vector<8x128xf32>
    %82 = arith.negf %81 : vector<8x128xf32>
    %83 = math.exp %82 : vector<8x128xf32>
    %cst_28 = arith.constant 1.000000e+00 : f32
    %84 = vector.broadcast %cst_28 : f32 to vector<8x128xf32>
    %85 = arith.addf %84, %83 : vector<8x128xf32>
    %86 = arith.divf %84, %85 : vector<8x128xf32>
    %87 = vector.extract_strided_slice %86 {offsets = [7, 0], sizes = [1, 128], strides = [1, 1]} : vector<8x128xf32> to vector<1x128xf32>
    %cst_29 = arith.constant 1.000000e+00 : f32
    %88 = vector.broadcast %cst_29 : f32 to vector<1x128xf32>
    %89 = vector.extract_strided_slice %86 {offsets = [0, 0], sizes = [7, 128], strides = [1, 1]} : vector<8x128xf32> to vector<7x128xf32>
    %90 = tpu.concatenate %88, %89 in 0 : vector<1x128xf32>, vector<7x128xf32> -> vector<8x128xf32>
    %cst_30 = arith.constant 0.000000e+00 : f32
    %91 = vector.broadcast %cst_30 : f32 to vector<1x128xf32>
    %92 = vector.extract_strided_slice %80 {offsets = [0, 0], sizes = [7, 128], strides = [1, 1]} : vector<8x128xf32> to vector<7x128xf32>
    %93 = tpu.concatenate %91, %92 in 0 : vector<1x128xf32>, vector<7x128xf32> -> vector<8x128xf32>
    %94 = arith.mulf %86, %93 : vector<8x128xf32>
    %95 = arith.addf %94, %80 : vector<8x128xf32>
    %96 = arith.mulf %86, %90 : vector<8x128xf32>
    %cst_31 = arith.constant 1.000000e+00 : f32
    %97 = vector.broadcast %cst_31 : f32 to vector<2x128xf32>
    %98 = vector.extract_strided_slice %96 {offsets = [0, 0], sizes = [6, 128], strides = [1, 1]} : vector<8x128xf32> to vector<6x128xf32>
    %99 = tpu.concatenate %97, %98 in 0 : vector<2x128xf32>, vector<6x128xf32> -> vector<8x128xf32>
    %cst_32 = arith.constant 0.000000e+00 : f32
    %100 = vector.broadcast %cst_32 : f32 to vector<2x128xf32>
    %101 = vector.extract_strided_slice %95 {offsets = [0, 0], sizes = [6, 128], strides = [1, 1]} : vector<8x128xf32> to vector<6x128xf32>
    %102 = tpu.concatenate %100, %101 in 0 : vector<2x128xf32>, vector<6x128xf32> -> vector<8x128xf32>
    %103 = arith.mulf %96, %102 : vector<8x128xf32>
    %104 = arith.addf %103, %95 : vector<8x128xf32>
    %105 = arith.mulf %96, %99 : vector<8x128xf32>
    %cst_33 = arith.constant 1.000000e+00 : f32
    %106 = vector.broadcast %cst_33 : f32 to vector<4x128xf32>
    %107 = vector.extract_strided_slice %105 {offsets = [0, 0], sizes = [4, 128], strides = [1, 1]} : vector<8x128xf32> to vector<4x128xf32>
    %108 = tpu.concatenate %106, %107 in 0 : vector<4x128xf32>, vector<4x128xf32> -> vector<8x128xf32>
    %cst_34 = arith.constant 0.000000e+00 : f32
    %109 = vector.broadcast %cst_34 : f32 to vector<4x128xf32>
    %110 = vector.extract_strided_slice %104 {offsets = [0, 0], sizes = [4, 128], strides = [1, 1]} : vector<8x128xf32> to vector<4x128xf32>
    %111 = tpu.concatenate %109, %110 in 0 : vector<4x128xf32>, vector<4x128xf32> -> vector<8x128xf32>
    %112 = arith.mulf %105, %111 : vector<8x128xf32>
    %113 = arith.addf %112, %104 : vector<8x128xf32>
    %114 = arith.mulf %105, %108 : vector<8x128xf32>
    %c1_35 = arith.constant 1 : index
    %c0_36 = arith.constant 0 : index
    %115 = vector.load %arg9[%c1_35, %c0_36] : memref<2x128xf32, #tpu.memory_space<vmem>>, vector<1x128xf32>
    %116 = vector.broadcast %115 : vector<1x128xf32> to vector<8x128xf32>
    %117 = arith.mulf %114, %116 : vector<8x128xf32>
    %118 = arith.addf %117, %113 : vector<8x128xf32>
    %119 = vector.extract_strided_slice %118 {offsets = [7, 0], sizes = [1, 128], strides = [1, 1]} : vector<8x128xf32> to vector<1x128xf32>
    %c1_37 = arith.constant 1 : index
    %c0_38 = arith.constant 0 : index
    %120 = vector.load %arg9[%c1_37, %c0_38] : memref<2x128xf32, #tpu.memory_space<vmem>>, vector<1x128xf32>
    tpu.vector_store %arg9[%c1_37, %c0_38], %119 {strides = array<i32>} : memref<2x128xf32, #tpu.memory_space<vmem>>, vector<1x128xf32>,
    %121 = arith.mulf %79, %118 : vector<8x128xf32>
    %122 = arith.addf %63, %121 : vector<8x128xf32>
    %c0_39 = arith.constant 0 : index
    %c0_40 = arith.constant 0 : index
    %c0_41 = arith.constant 0 : index
    %123 = vector.load %arg6[%c0_39, %c0_40, %c0_41] : memref<1x8x128xf32, #tpu.memory_space<vmem>>, vector<1x8x128xf32>
    %124 = vector.shape_cast %123 : vector<1x8x128xf32> to vector<8x128xf32>
    %125 = vector.shape_cast %122 : vector<8x128xf32> to vector<1x8x128xf32>
    tpu.vector_store %arg6[%c0_39, %c0_40, %c0_41], %125 {strides = array<i32>} : memref<1x8x128xf32, #tpu.memory_space<vmem>>, vector<1x8x128xf32>,
    %c0_i32_42 = arith.constant 0 : i32
    %126 = arith.cmpi eq, %arg1, %c0_i32_42 : i32
    %127 = arith.extui %126 : i1 to i32
    %c0_i32_43 = arith.constant 0 : i32
    %128 = arith.cmpi ne, %127, %c0_i32_43 : i32
    scf.if %128 {
      %129 = tpu.concatenate %28, %87 in 0 : vector<1x128xf32>, vector<1x128xf32> -> vector<2x128xf32>
      %c0_44 = arith.constant 0 : index
      %c0_45 = arith.constant 0 : index
      %c0_46 = arith.constant 0 : index
      %130 = vector.load %arg7[%c0_44, %c0_45, %c0_46] : memref<1x2x128xf32, #tpu.memory_space<vmem>>, vector<1x2x128xf32>
      %131 = vector.shape_cast %130 : vector<1x2x128xf32> to vector<2x128xf32>
      %132 = vector.shape_cast %129 : vector<2x128xf32> to vector<1x2x128xf32>
      tpu.vector_store %arg7[%c0_44, %c0_45, %c0_46], %132 {strides = array<i32>} : memref<1x2x128xf32, #tpu.memory_space<vmem>>, vector<1x2x128xf32>,
      %c0_47 = arith.constant 0 : index
      %c0_48 = arith.constant 0 : index
      %133 = vector.load %arg9[%c0_47, %c0_48] : memref<2x128xf32, #tpu.memory_space<vmem>>, vector<2x128xf32>
      %c0_49 = arith.constant 0 : index
      %c0_50 = arith.constant 0 : index
      %c0_51 = arith.constant 0 : index
      %134 = vector.load %arg8[%c0_49, %c0_50, %c0_51] : memref<1x2x128xf32, #tpu.memory_space<vmem>>, vector<1x2x128xf32>
      %135 = vector.shape_cast %134 : vector<1x2x128xf32> to vector<2x128xf32>
      %136 = vector.shape_cast %133 : vector<2x128xf32> to vector<1x2x128xf32>
      tpu.vector_store %arg8[%c0_49, %c0_50, %c0_51], %136 {strides = array<i32>} : memref<1x2x128xf32, #tpu.memory_space<vmem>>, vector<1x2x128xf32>,
    } else {
    }
    return
  }
  func.func @transform_0(%arg0: i32, %arg1: i32) -> (i32, i32, i32) {
    %c0_i32 = arith.constant 0 : i32
    %c0_i32_0 = arith.constant 0 : i32
    return %arg0, %arg1, %c0_i32 : i32, i32, i32
  }
  func.func @transform_1(%arg0: i32, %arg1: i32) -> (i32, i32, i32) {
    %c0_i32 = arith.constant 0 : i32
    %c0_i32_0 = arith.constant 0 : i32
    %c0_i32_1 = arith.constant 0 : i32
    %c0_i32_2 = arith.constant 0 : i32
    return %c0_i32, %c0_i32_0, %c0_i32_1 : i32, i32, i32
  }
  func.func @transform_2(%arg0: i32, %arg1: i32) -> (i32, i32) {
    %c0_i32 = arith.constant 0 : i32
    %c0_i32_0 = arith.constant 0 : i32
    %c0_i32_1 = arith.constant 0 : i32
    return %c0_i32, %c0_i32_0 : i32, i32
  }
  func.func @transform_3(%arg0: i32, %arg1: i32) -> (i32, i32, i32) {
    %c0_i32 = arith.constant 0 : i32
    %c0_i32_0 = arith.constant 0 : i32
    %c0_i32_1 = arith.constant 0 : i32
    return %arg0, %c0_i32, %c0_i32_0 : i32, i32, i32
  }
  func.func @transform_4(%arg0: i32, %arg1: i32) -> (i32, i32, i32) {
    %c0_i32 = arith.constant 0 : i32
    %c0_i32_0 = arith.constant 0 : i32
    return %arg0, %arg1, %c0_i32 : i32, i32, i32
  }
  func.func @transform_5(%arg0: i32, %arg1: i32) -> (i32, i32, i32) {
    %c0_i32 = arith.constant 0 : i32
    %c0_i32_0 = arith.constant 0 : i32
    %c0_i32_1 = arith.constant 0 : i32
    return %arg0, %c0_i32, %c0_i32_0 : i32, i32, i32
  }
  func.func @transform_6(%arg0: i32, %arg1: i32) -> (i32, i32, i32) {
    %c0_i32 = arith.constant 0 : i32
    %c0_i32_0 = arith.constant 0 : i32
    %c0_i32_1 = arith.constant 0 : i32
    return %arg0, %c0_i32, %c0_i32_0 : i32, i32, i32
  }
}

</mosaic_0001>

<bundles_post_ra>
// kernel: tpu_custom_call.1
= control target key start
LH: loop header
LB: loop body
LE: loop exit
PB: predicated region body
PF: predicated region fallthrough
CT: control target
= control target key end

     0   :  { %s2143_s0 = inlined_call_operand.hbm [shape: f32[2,8,128], index: 0, kind: input, shape index: {}]   ;;  %s2144_s1 = inlined_call_operand.hbm [shape: bf16[2,128,384], index: 1, kind: input, shape index: {}]   ;;  %s2145_s2 = inlined_call_operand.hbm [shape: f32[2,128], index: 2, kind: input, shape index: {}]   ;;  %s2146_s3 = inlined_call_operand.hbm [shape: f32[2,2,128], index: 3, kind: input, shape index: {}]   ;;  %s2147_s4 = inlined_call_operand.hbm [shape: f32[2,8,128], index: 4, kind: output, shape index: {0}]   ;;  %s2148_s5 = inlined_call_operand.hbm [shape: f32[2,2,128], index: 5, kind: output, shape index: {1}]   ;;  %s2149_s6 = inlined_call_operand.hbm [shape: f32[2,2,128], index: 6, kind: output, shape index: {2}]  }
   0x1   :  { %2157 = sst [smem:[#allocation26_spill]] %s2144_s1 }
   0x2   :  { %2158 = sst [smem:[#allocation27_spill]] %s2145_s2 }
   0x3   :  { %12 = vsyncpa [#allocation4], 0 }
   0x4   :  { %14 = vsyncpa [#allocation4 + $0x1], 0 }
   0x5   :  { %15 = vsyncpa [#allocation7], 0 }
   0x6   :  { %16 = vsyncpa [#allocation10], 0 }
   0x7   :  { %18 = vsyncpa [#allocation10 + $0x1], 0 }
   0x8   :  { %19 = vsyncpa [#allocation5], 0 }
   0x9   :  { %21 = vsyncpa [#allocation5 + $0x1], 0 }
   0xa   :  { %22 = vsyncpa [#allocation13], 0 }
   0xb   :  { %24 = vsyncpa [#allocation13 + $0x1], 0  ;;  %s1884_s21 = smov 0   ;;  %s1886_s22 = smov 0  }
   0xc   :  { %s1888_s23 = smov 0   ;;  %s1890_s24 = smov 0  }
   0xd   :  { %s1892_s25 = smov 0   ;;  %s1894_s26 = smov 0  }
   0xe LB: > { %2159 = sst [smem:[#allocation20_spill]] %s1823_s21  ;;  %s1915_s27 = sadd.s32 4294967295, %s1843_s26   ;;  %s1843_s26 = sphi %s1894_s26, %s30_s26   ;;  %s1839_s25 = sphi %s1892_s25, %s2184_s25   ;;  %s1835_s24 = sphi %s1890_s24, %s2183_s24   ;;  %s1831_s23 = sphi %s1888_s23, %s2179_s23   ;;  %s1827_s22 = sphi %s1886_s22, %s2182_s22   ;;  %s1823_s21 = sphi %s1884_s21, %s2181_s21  }
   0xf   : > { %2160 = sst [smem:[#allocation21_spill]] %s1831_s23  ;;  %p1191_p0 = scmp.ge.s32.totalorder %s1843_s26, 1 }
  0x10   : > { %2161 = sst [smem:[#allocation22_spill]] %s1843_s26  ;;  %p65_p1 = scmp.eq.s32.totalorder %s1915_s27, 0 }
  0x11   : > { %p223_p2 = scmp.lt.s32.totalorder %s1843_s26, 3  ;;  %s2162_s1 = sld [smem:[#allocation26_spill]] }
  0x12   : > { %s1845_s8 = smov [#allocation6]   ;;  %p1194_p6 = scmp.ge.s32.totalorder %s1843_s26, 2 }
  0x13   : > { %p1923_p3 = pnand %p1191_p0, %p223_p2  ;;  %s236_s9 = sshll.u32 %s1845_s8, 4  ;;  %s237_s9 = int_to_ptr.vmem [resolvable:$true] %s236_s9 }
  0x14   : > { %s2164_s2 = sld [smem:[#allocation27_spill]]  ;;  %s1846_s13 = smov 192  }
  0x15   : > { %p1475_p4 = pneg %p1923_p3  ;;  %s1847_s14 = smov 12  }
  0x16   : > { %s1848_s15 = smov [#allocation8]   ;;  %s2150_s17 = sadd.s32 4294967294, %s1843_s26  }
  0x17   : > { %s234_s30 = sshll.u32 %s2162_s1, 4  ;;  %p1476_p5 = pnand %p1475_p4, %p65_p1  ;;  %s235_s30 = int_to_ptr.hbm [resolvable:$true] %s234_s30 }
  0x18   : > { %s251_s16 = sshll.u32 %s1848_s15, 4  ;;  %s42_s18 = sadd.s32 1, %s1839_s25  ;;  %s252_s16 = int_to_ptr.vmem [resolvable:$true] %s251_s16 }
  0x19   : > { %1478 = dma.hbm_to_vmem [thread:$0]  (!%p1476_p5), %s235_s30, 6144, %s237_s9, [#allocation7], %s1846_s13, %s1846_s13, %s1847_s14  }
  0x1a   : > { %s249_s12 = sshll.u32 %s2164_s2, 4  ;;  %p44_p7 = scmp.ge.s32.totalorder %s42_s18, 2  ;;  %s250_s12 = int_to_ptr.hbm [resolvable:$true] %s249_s12 }
  0x1b   : > { %1481 = dma.hbm_to_vmem [thread:$0]  (!%p1476_p5), %s250_s12, 32, %s252_s16, [#allocation7]  }
  0x1c   : > { %s51_s19 = sadd.s32 1, %s1831_s23  ;;  %p58_p8 = scmp.ne.s32.totalorder %s1831_s23, %s1827_s22 }
  0x1d   : > { %p59_p9 = scmp.eq.s32.totalorder %s1843_s26, 0  ;;  %s2186_s18 = smov (%p44_p7, %s42_s18), 0 }
  0x1e   : > { %2165 = sst [smem:[#allocation23_spill]] %s2186_s18  ;;  %p64_p11 = scmp.ne.s32.totalorder %s1827_s22, %s1823_s21 }
  0x1f   : > { %p1943_p10 = por %p59_p9, %p58_p8  ;;  %s46_s28 = ssub.s32 %s1839_s25, %s2186_s18 }
  0x20   : > { %p158_p12 = scmp.eq.s32.totalorder %s1915_s27, 1  ;;  %p49_p13 = scmp.eq.s32.totalorder %s46_s28, 0 }
  0x21   : > { %p1954_p0 = por %p65_p1, %p64_p11  ;;  %p164_p4 = scmp.eq.s32.totalorder %s2150_s17, 1 }
  0x22   : > { %p1958_p2 = por %p158_p12, %p58_p8  ;;  %p1501_p7 = scmp.lt.s32.totalorder %s1843_s26, 2 }
  0x23   : > { %s1965_s8 = scalar_select %p49_p13, %s1831_s23, %s51_s19  }
  0x24   : > { %p1967_p5 = por %p164_p4, %p64_p11  ;;  %s262_s10 = sand.u32 1, %s1831_s23  }
  0x25   : > { %2169 = sst [smem:[#allocation24_spill]] %s1965_s8  ;;  %s1196_s11 = sshll.u32 %s1839_s25, 3 }
  0x26   : > { %s2170_s9 = scalar_select %p1967_p5, 1, 0 }
  0x27   : > { %s1195_s12 = sshll.u32 %s262_s10, 3  ;;  %s271_s15 = scalar_lea.hbm %s2143_s0, %s1196_s11 }
  0x28   : > { %2171 = sst [smem:[#allocation25_spill]] %s2170_s9  ;;  %s273_s16 = sshll.u32 %s271_s15, 4  ;;  %s274_s16 = int_to_ptr.hbm [resolvable:$true] %s273_s16 }
  0x29   : > { %s266_s28 = scalar_lea.vmem [#allocation3], %s1195_s12  ;;  %p1483_p8 = pnand %p1501_p7, %p1943_p10 }
  0x2a   : > { %s275_s1 = sshll.u32 %s266_s28, 4  ;;  %s1197_s19 = sshll.u32 %s262_s10, 1  ;;  %s276_s1 = int_to_ptr.vmem [resolvable:$true] %s275_s1 }
  0x2b   : > { %s1198_s17 = sshll.u32 %s1839_s25, 1  ;;  %s263_s2 = scalar_lea.sflag [#allocation4], %s262_s10 }
  0x2c   : > { %1485 = dma.hbm_to_vmem [thread:$0]  (!%p1483_p8), %s274_s16, 128, %s276_s1, %s263_s2  }
  0x2d   : > { %s290_s23 = scalar_lea.hbm %s2146_s3, %s1198_s17  ;;  %s286_s26 = scalar_lea.vmem [#allocation9], %s1197_s19 }
  0x2e   : > { %s294_s9 = sshll.u32 %s286_s26, 4  ;;  %s292_s21 = sshll.u32 %s290_s23, 4  ;;  %s295_s9 = int_to_ptr.vmem [resolvable:$true] %s294_s9  ;;  %s293_s21 = int_to_ptr.hbm [resolvable:$true] %s292_s21 }
  0x2f   : > { %s283_s11 = scalar_lea.sflag [#allocation10], %s262_s10  ;;  %303 = sbr.rel (%p1923_p3) target bundleno = 726 (0x2d6), region = 36 }
  0x30   : > { %1488 = dma.hbm_to_vmem [thread:$0]  (!%p1483_p8), %s293_s21, 32, %s295_s9, %s283_s11  }
  0x31   : > { %s1986_s20 = sand.u32 (!%p1923_p3), 1, %s1827_s22  }
  0x32   : > { %s1200_s1 = sshll.u32 (!%p1923_p3), %s1986_s20, 3  ;;  %s306_s2 = scalar_lea.sflag (!%p1923_p3), [#allocation4], %s1986_s20 }
  0x33   : > { %s309_s17 = scalar_lea.vmem (!%p1923_p3), [#allocation3], %s1200_s1 }
  0x34   : > { %1802 = dma.done.wait (%p1954_p0), %s306_s2, 128  }
  0x35   : > { %1804 = vsyncadd (%p1954_p0), %s306_s2, 4294967168 }
  0x36   : > { %1806 = dma.done.wait (%p65_p1), [#allocation7], 6176  }
  0x37   : > { %1808 = vsyncadd (%p65_p1), [#allocation7], 4294961120  ;;  %s2001_s21 = sshll.u32 %s1986_s20, 1  ;;  %s326_s23 = scalar_lea.sflag [#allocation10], %s1986_s20 }
  0x38   : > { %s329_s26 = scalar_lea.vmem [#allocation9], %s2001_s21 }
  0x39   : > { %1810 = dma.done.wait (%p1954_p0), %s326_s23, 32  }
  0x3a   : > { %1812 = vsyncadd (%p1954_p0), %s326_s23, 4294967264  ;;  %v2009_v0 = vld [vmem:[%s309_s17] sm:$0xff]  ;;  %v1293_v1 = vld [vmem:[#allocation6 + $0xa8] sm:$0xf]  ;;  %vm621_vm5 = vcmask 1040384   ;;  %vm633_vm8 = vcmask 1041408  }
  0x3b   : > { %v1431_v2 = vld [vmem:[#allocation6 + $0xb0] sm:$0xf0]  ;;  %v381_v3 = vmul.f32 %v2009_v0, %v2009_v0  ;;  %v1430_v5 = vld [vmem:[#allocation6 + $0xac] sm:$0xf]  ;;  %v1295_v6 = vld [vmem:[#allocation6 + $0xb4] sm:$0xf0] }
  0x3c   : > { %v1294_v4 = vor.u32 %v1431_v2, %v1293_v1  ;;  %v1301_v7 = vld [vmem:[#allocation6 + $0xb0] sm:$0xf]  ;;  %v1298_v8 = vor.u32 %v1430_v5, %v1295_v6  ;;  %v1432_v9 = vld [vmem:[#allocation6 + $0xb8] sm:$0xf0]  ;;  %v1427_v14 = vld [vmem:[#allocation6 + $0x94] sm:$0xf] }
  0x3d   : > { %v1281_v10 = vld [vmem:[#allocation6 + $0x90] sm:$0xf]  ;;  %v1428_v11 = vld [vmem:[#allocation6 + $0x98] sm:$0xf0]  ;;  %382 = vadd.xlane.f32.xlu0 %v381_v3  ;;  %v1302_v12 = vor.u32 %v1432_v9, %v1301_v7  ;;  %v1283_v15 = vld [vmem:[#allocation6 + $0x9c] sm:$0xf0] }
  0x3e   : > { %560 = vmatpush.bf16.msra.mxu0 %v1294_v4  ;;  %v1282_v13 = vor.u32 %v1428_v11, %v1281_v10  ;;  %v1289_v16 = vld [vmem:[#allocation6 + $0x98] sm:$0xf]  ;;  %573 = vmatpush.bf16.msra.mxu1 %v1298_v8  ;;  %v1286_v17 = vor.u32 %v1427_v14, %v1283_v15  ;;  %v1429_v18 = vld [vmem:[#allocation6 + $0xa0] sm:$0xf0]  ;;  %v1424_v22 = vld [vmem:[#allocation6 + $0x7c] sm:$0xf] }
  0x3f   : > { %586 = vmatpush.bf16.msra.mxu2 %v1302_v12  ;;  %v1290_v19 = vor.u32 %v1429_v18, %v1289_v16  ;;  %v1269_v20 = vld [vmem:[#allocation6 + $0x78] sm:$0xf]  ;;  %v1425_v21 = vld [vmem:[#allocation6 + $0x80] sm:$0xf0]  ;;  %v1271_v24 = vld [vmem:[#allocation6 + $0x84] sm:$0xf0] }
  0x40   : > { %v1270_v23 = vor.u32 %v1425_v21, %v1269_v20  ;;  %v1277_v25 = vld [vmem:[#allocation6 + $0x80] sm:$0xf]  ;;  %v1426_v26 = vld [vmem:[#allocation6 + $0x88] sm:$0xf0]  ;;  %v1274_v27 = vor.u32 %v1424_v22, %v1271_v24  ;;  %v1421_v31 = vld [vmem:[#allocation6 + $0x64] sm:$0xf] }
  0x41   : > { %v1278_v28 = vor.u32 %v1426_v26, %v1277_v25  ;;  %v1257_v29 = vld [vmem:[#allocation6 + $0x60] sm:$0xf]  ;;  %v1422_v30 = vld [vmem:[#allocation6 + $0x68] sm:$0xf0]  ;;  %v1259_v33 = vld [vmem:[#allocation6 + $0x6c] sm:$0xf0] }
  0x42   : > { %561 = vmatpush.bf16.msra.mxu0 %v1282_v13  ;;  %574 = vmatpush.bf16.msra.mxu1 %v1286_v17  ;;  %v1258_v32 = vor.u32 %v1422_v30, %v1257_v29  ;;  %v1265_v34 = vld [vmem:[#allocation6 + $0x68] sm:$0xf]  ;;  %v1423_v35 = vld [vmem:[#allocation6 + $0x70] sm:$0xf0]  ;;  %v1262_v36 = vor.u32 %v1421_v31, %v1259_v33  ;;  %v1418_v40 = vld [vmem:[#allocation6 + $0x4c] sm:$0xf] }
  0x43   : > { %587 = vmatpush.bf16.msra.mxu2 %v1290_v19  ;;  %v1266_v37 = vor.u32 %v1423_v35, %v1265_v34  ;;  %v1245_v38 = vld [vmem:[#allocation6 + $0x48] sm:$0xf]  ;;  %v1419_v39 = vld [vmem:[#allocation6 + $0x50] sm:$0xf0]  ;;  %v1247_v42 = vld [vmem:[#allocation6 + $0x54] sm:$0xf0] }
  0x44   : > { %v1246_v41 = vor.u32 %v1419_v39, %v1245_v38  ;;  %v1253_v43 = vld [vmem:[#allocation6 + $0x50] sm:$0xf]  ;;  %v1420_v44 = vld [vmem:[#allocation6 + $0x58] sm:$0xf0]  ;;  %v1250_v45 = vor.u32 %v1418_v40, %v1247_v42  ;;  %v1415_v49 = vld [vmem:[#allocation6 + $0x34] sm:$0xf] }
  0x45   : > { %v1254_v46 = vor.u32 %v1420_v44, %v1253_v43  ;;  %v1233_v47 = vld [vmem:[#allocation6 + $0x30] sm:$0xf]  ;;  %v1416_v48 = vld [vmem:[#allocation6 + $0x38] sm:$0xf0]  ;;  %v1235_v51 = vld [vmem:[#allocation6 + $0x3c] sm:$0xf0] }
  0x46   : > { %562 = vmatpush.bf16.msra.mxu0 %v1270_v23  ;;  %575 = vmatpush.bf16.msra.mxu1 %v1274_v27  ;;  %v1234_v50 = vor.u32 %v1416_v48, %v1233_v47  ;;  %v1241_v52 = vld [vmem:[#allocation6 + $0x38] sm:$0xf]  ;;  %v1417_v53 = vld [vmem:[#allocation6 + $0x40] sm:$0xf0]  ;;  %v1238_v54 = vor.u32 %v1415_v49, %v1235_v51  ;;  %v1412_v58 = vld [vmem:[#allocation6 + $0x1c] sm:$0xf] }
  0x47   : > { %588 = vmatpush.bf16.msra.mxu2 %v1278_v28  ;;  %v1242_v55 = vor.u32 %v1417_v53, %v1241_v52  ;;  %v1221_v56 = vld [vmem:[#allocation6 + $0x18] sm:$0xf]  ;;  %v1413_v57 = vld [vmem:[#allocation6 + $0x20] sm:$0xf0]  ;;  %v1223_v60 = vld [vmem:[#allocation6 + $0x24] sm:$0xf0] }
  0x48   : > { %v1222_v59 = vor.u32 %v1413_v57, %v1221_v56  ;;  %v1229_v61 = vld [vmem:[#allocation6 + $0x20] sm:$0xf]  ;;  %v1414_v62 = vld [vmem:[#allocation6 + $0x28] sm:$0xf0]  ;;  %v1226_v63 = vor.u32 %v1412_v58, %v1223_v60  ;;  %v1409_v4 = vld [vmem:[#allocation6 + $0x4] sm:$0xf] }
  0x49   : > { %v1230_v1 = vor.u32 %v1414_v62, %v1229_v61  ;;  %v1209_v2 = vld [vmem:[#allocation6] sm:$0xf]  ;;  %v1410_v3 = vld [vmem:[#allocation6 + $0x8] sm:$0xf0]  ;;  %v1211_v6 = vld [vmem:[#allocation6 + $0xc] sm:$0xf0] }
  0x4a   : > { %563 = vmatpush.bf16.msra.mxu0 %v1258_v32  ;;  %576 = vmatpush.bf16.msra.mxu1 %v1262_v36  ;;  %v1210_v5 = vor.u32 %v1410_v3, %v1209_v2  ;;  %v1217_v7 = vld [vmem:[#allocation6 + $0x8] sm:$0xf]  ;;  %v1411_v8 = vld [vmem:[#allocation6 + $0x10] sm:$0xf0]  ;;  %v1214_v9 = vor.u32 %v1409_v4, %v1211_v6  ;;  %v1557_v19 = vld [vmem:[#allocation8] ss:$0 sm:$0xff] }
  0x4b   : > { %589 = vmatpush.bf16.msra.mxu2 %v1266_v37  ;;  %v1218_v10 = vor.u32 %v1411_v8, %v1217_v7  ;;  %v378_v27 = vld [vmem:[%s329_s26] sm:$0x3]  ;;  %v1390_v43 = vld [vmem:[#allocation6 + $0x168] sm:$0xf]  ;;  %v1455_v44 = vld [vmem:[#allocation6 + $0x170] sm:$0xf0] }
  0x4c   : > { %379 = vst [vmem:[#allocation2] sm:$0x3] %v378_v27  ;;  %v1392_v47 = vld [vmem:[#allocation6 + $0x174] sm:$0xf0]  ;;  %v1398_v48 = vld [vmem:[#allocation6 + $0x170] sm:$0xf] }
  0x4d   : > { %v1456_v49 = vld [vmem:[#allocation6 + $0x178] sm:$0xf0]  ;;  %v1378_v53 = vld [vmem:[#allocation6 + $0x150] sm:$0xf]  ;;  %v1380_v57 = vld [vmem:[#allocation6 + $0x15c] sm:$0xf0] }
  0x4e   : > { %564 = vmatpush.bf16.msra.mxu0 %v1246_v41  ;;  %577 = vmatpush.bf16.msra.mxu1 %v1250_v45  ;;  %v1454_v45 = vld [vmem:[#allocation6 + $0x16c] sm:$0xf]  ;;  %v1399_v52 = vor.u32 %v1456_v49, %v1398_v48  ;;  %v1386_v58 = vld [vmem:[#allocation6 + $0x158] sm:$0xf]  ;;  %vm645_vm9 = vcmask 1043456   ;;  %s1405_s7 = sshll.u32 %s1835_s24, 1 }
  0x4f   : > { %590 = vmatpush.bf16.msra.mxu2 %v1254_v46  ;;  %v1391_v46 = vor.u32 %v1455_v44, %v1390_v43  ;;  %v1395_v51 = vor.u32 %v1454_v45, %v1392_v47  ;;  %v1356_v39 = vld [vmem:[#allocation6 + $0x12c] sm:$0xf0]  ;;  %v1342_v44 = vld [vmem:[#allocation6 + $0x108] sm:$0xf]  ;;  %v1443_v45 = vld [vmem:[#allocation6 + $0x110] sm:$0xf0]  ;;  %s985_s8 = scalar_lea.hbm %s2148_s5, %s1405_s7 }
  0x50   : > { %v1343_v47 = vor.u32 %v1443_v45, %v1342_v44  ;;  %v1344_v48 = vld [vmem:[#allocation6 + $0x114] sm:$0xf0]  ;;  %v1350_v49 = vld [vmem:[#allocation6 + $0x110] sm:$0xf]  ;;  %s954_s9 = sand.u32 1, %s1915_s27   ;;  %s366_s10 = scalar_lea.vmem [#allocation12], %s2001_s21 }
  0x51   : > { %841 = vmatpush.bf16.msra.mxu3 %v1391_v46  ;;  %v1442_v46 = vld [vmem:[#allocation6 + $0x10c] sm:$0xf]  ;;  %s2054_s12 = sshll.u32 %s366_s10, 4  ;;  %s989_s13 = sshll.u32 %s985_s8, 4  ;;  %s988_s12 = int_to_ptr.vmem [resolvable:$true] %s2054_s12  ;;  %s990_s13 = int_to_ptr.hbm [resolvable:$true] %s989_s13 }
  0x52   : > { %565 = vmatpush.bf16.msra.mxu0 %v1234_v50  ;;  %578 = vmatpush.bf16.msra.mxu1 %v1238_v54  ;;  %v1452_v54 = vld [vmem:[#allocation6 + $0x158] sm:$0xf0]  ;;  %s2062_s27 = scalar_lea.sflag [#allocation13], %s954_s9  ;;  %s1707_s14 = sshra.s32 %s990_s13, 4  ;;  %s1708_s14 = int_to_ptr.hbm [resolvable:$true] %s1707_s14 }
  0x53   : > { %591 = vmatpush.bf16.msra.mxu2 %v1242_v55  ;;  %v1451_v55 = vld [vmem:[#allocation6 + $0x154] sm:$0xf]  ;;  %v1379_v56 = vor.u32 %v1452_v54, %v1378_v53  ;;  %v1330_v53 = vld [vmem:[#allocation6 + $0xf0] sm:$0xf]  ;;  %v1440_v54 = vld [vmem:[#allocation6 + $0xf8] sm:$0xf0]  ;;  %p1714_p10 = scmp.lt.s32.totalorder %s1708_s14, %s2148_s5 }
  0x54   : > { %v1383_v61 = vor.u32 %v1451_v55, %v1380_v57  ;;  %v1439_v55 = vld [vmem:[#allocation6 + $0xf4] sm:$0xf]  ;;  %v1332_v57 = vld [vmem:[#allocation6 + $0xfc] sm:$0xf0]  ;;  %s1709_s15 = scalar_lea.hbm %s1708_s14, 2  ;;  %s1713_s19 = scalar_lea.hbm %s2148_s5, 4 }
  0x55   : > { %842 = vmatpush.bf16.msra.mxu3 %v1379_v56  ;;  %v1331_v56 = vor.u32 %v1440_v54, %v1330_v53  ;;  %p1710_p1 = scmp.ne.s32.totalorder %s1708_s14, %s1709_s15  ;;  %p1715_p11 = scmp.lt.s32.totalorder %s1713_s19, %s1709_s15 }
  0x56   : > { %566 = vmatpush.bf16.msra.mxu0 %v1222_v59  ;;  %579 = vmatpush.bf16.msra.mxu1 %v1226_v63  ;;  %v1453_v59 = vld [vmem:[#allocation6 + $0x160] sm:$0xf0] }
  0x57   : > { %592 = vmatpush.bf16.msra.mxu2 %v1230_v1  ;;  %v1387_v62 = vor.u32 %v1453_v59, %v1386_v58  ;;  %v1338_v58 = vld [vmem:[#allocation6 + $0xf8] sm:$0xf]  ;;  %v1441_v59 = vld [vmem:[#allocation6 + $0x100] sm:$0xf0]  ;;  %p1711_p3 = pnand %p1710_p1, %p1958_p2  ;;  %p1716_p12 = por %p1715_p11, %p1714_p10 }
  0x59   : > { %p1712_p9 = pneg %p1711_p3 }
  0x5a   : > { %567 = vmatpush.bf16.msra.mxu0 %v1210_v5  ;;  %580 = vmatpush.bf16.msra.mxu1 %v1214_v9 }
  0x5b   : > { %593 = vmatpush.bf16.msra.mxu2 %v1218_v10  ;;  %p1717_p13 = pnand %p1716_p12, %p1712_p9 }
  0x5e   : > { %854 = vmatpush.bf16.msrb.mxu0 %v1395_v51  ;;  %867 = vmatpush.bf16.msrb.mxu1 %v1399_v52  ;;  %v1347_v51 = vor.u32 %v1442_v46, %v1344_v48 }
  0x62   : > { %855 = vmatpush.bf16.msrb.mxu0 %v1383_v61  ;;  %868 = vmatpush.bf16.msrb.mxu1 %v1387_v62  ;;  %v1339_v61 = vor.u32 %v1441_v59, %v1338_v58  ;;  %v1318_v62 = vld [vmem:[#allocation6 + $0xd8] sm:$0xf] }
  0xb0   : > { %v383_v11 = vpop.xlane.xlu0 %382 }
  0xb1   : > { %v384_v12 = vmax.f32 %v383_v11, 1e-24 }
  0xb3   : > { %1561 = vrsqrt.f32 %v384_v12  ;;  %vm391_vm1 = vweird.f32 %v384_v12 }
  0xb9   : > { %v1562_v13 = vpop.eup %1561 }
  0xba   : > { %v386_v14 = vmul.f32 %v1562_v13, %v384_v12  ;;  %vm392_vm0 = vweird.f32 %v1562_v13 }
  0xbb   : > { %vm393_vm2 = vmor %vm391_vm1, %vm392_vm0 }
  0xbc   : > { %v387_v15 = vmul.f32 %v1562_v13, %v386_v14 }
  0xbe   : > { %v388_v16 = vmul.f32 0.5, %v387_v15 }
  0xc0   : > { %v389_v17 = vsub.f32 1.5, %v388_v16  ;;  %v1558_v16 = vld [vmem:[#allocation2] ss:$0 sm:$0xff] }
  0xc2   : > { %v390_v18 = vmul.f32 %v1562_v13, %v389_v17 }
  0xc4   : > { %v394_v20 = vsel %vm393_vm2, %v1562_v13, %v390_v18 }
  0xc5   : > { %v395_v21 = vmul.f32 %v394_v20, %v2009_v0 }
  0xc7   : > { %v398_v22 = vmul.f32 %v1557_v19, %v395_v21 }
  0xc9   : > { %v399_v23 = vpack.c.bf16 %v398_v22, %v398_v22 }
  0xcb   : > { %568 = vmatmul.bf16.vlgmr.msra.gmra.mxu0 %v399_v23  ;;  %581 = vmatmul.bf16.vlgmr.msra.gmra.mxu1 %v399_v23 }
  0xcc   : > { %594 = vmatmul.bf16.vlgmr.msra.gmra.mxu2 %v399_v23 }
 0x148   : > { %v2014_v24 = vpop.f32.mrf.mxu0  ;;  %v582_v25 = vpop.f32.mrf.mxu1 }
 0x149   : > { %v624_v38 = vrot.slane %v582_v25, 7 }
 0x14b   : > { %v626_v63 = vsel %vm621_vm5, 0.0, %v624_v38 }
 0x14f   : > { %v595_v26 = vpop.f32.mrf.mxu2 }
 0x150   : > { %v1303_v28 = vmul.f32 -1.442695, %v595_v26  ;;  %v571_v29 = vpop.f32.mrf.mxu0  ;;  %v584_v30 = vpop.f32.mrf.mxu1 }
 0x151   : > { %v1449_v29 = vld [vmem:[#allocation6 + $0x140] sm:$0xf0]  ;;  %v1448_v30 = vld [vmem:[#allocation6 + $0x13c] sm:$0xf] }
 0x152   : > { %1563 = vpow2.f32 %v1303_v28  ;;  %v1366_v28 = vld [vmem:[#allocation6 + $0x138] sm:$0xf] }
 0x157   : > { %v597_v31 = vpop.f32.mrf.mxu2 }
 0x158   : > { %v1564_v32 = vpop.eup %1563  ;;  %v1367_v31 = vor.u32 %v1449_v29, %v1366_v28  ;;  %v1559_v29 = vld [vmem:[#allocation8 + $0x1] ss:$0 sm:$0xff] }
 0x159   : > { %v602_v33 = vadd.f32 1.0, %v1564_v32  ;;  %v1368_v32 = vld [vmem:[#allocation6 + $0x144] sm:$0xf0] }
 0x15a   : > { %843 = vmatpush.bf16.msra.mxu3 %v1367_v31 }
 0x15b   : > { %1565 = vrcp.f32 %v602_v33  ;;  %v614_v35 = vand.u32 2147483648, %v602_v33  ;;  %vm608_vm4 = vweird.f32 %v602_v33  ;;  %v612_v40 = vand.u32 2147483647, %v602_v33 }
 0x15d   : > { %v615_v41 = vor.u32 1.1754944e-38, %v614_v35  ;;  %vm613_vm7 = vcmp.eq.f32.partialorder %v612_v40, 8.507059e+37  ;;  %v1371_v35 = vor.u32 %v1448_v30, %v1368_v32  ;;  %v1362_v40 = vld [vmem:[#allocation6 + $0x128] sm:$0xf] }
 0x15f   : > { %856 = vmatpush.bf16.msrb.mxu0 %v1371_v35 }
 0x161   : > { %v1566_v34 = vpop.eup %1565 }
 0x162   : > { %v604_v36 = vmul.f32 %v1566_v34, %v602_v33  ;;  %vm609_vm3 = vweird.f32 %v1566_v34  ;;  %v1374_v33 = vld [vmem:[#allocation6 + $0x140] sm:$0xf] }
 0x163   : > { %vm2018_vm6 = vmor %vm608_vm4, %vm609_vm3 }
 0x164   : > { %v605_v37 = vsub.f32 1.0, %v604_v36 }
 0x166   : > { %v606_v42 = vmul.f32 %v1566_v34, %v605_v37  ;;  %v1446_v37 = vld [vmem:[#allocation6 + $0x128] sm:$0xf0] }
 0x168   : > { %v607_v50 = vadd.f32 %v1566_v34, %v606_v42 }
 0x16a   : > { %v611_v60 = vsel %vm2018_vm6, %v1566_v34, %v607_v50  ;;  %v1450_v34 = vld [vmem:[#allocation6 + $0x148] sm:$0xf0]  ;;  %v1444_v50 = vld [vmem:[#allocation6 + $0x118] sm:$0xf0] }
 0x16b   : > { %v2025_v1 = vsel %vm613_vm7, %v615_v41, %v611_v60  ;;  %v1375_v36 = vor.u32 %v1450_v34, %v1374_v33  ;;  %v1447_v41 = vld [vmem:[#allocation6 + $0x130] sm:$0xf0]  ;;  %v1351_v52 = vor.u32 %v1444_v50, %v1350_v49  ;;  %v1335_v60 = vor.u32 %v1439_v55, %v1332_v57 }
 0x16c   : > { %v619_v2 = vrot.slane %v2025_v1, 7  ;;  %v627_v3 = vmul.f32 %v626_v63, %v2025_v1  ;;  %v1363_v43 = vor.u32 %v1447_v41, %v1362_v40  ;;  %v1437_v63 = vld [vmem:[#allocation6 + $0xe0] sm:$0xf0] }
 0x16d   : > { %869 = vmatpush.bf16.msrb.mxu1 %v1375_v36 }
 0x16e   : > { %v622_v4 = vsel %vm621_vm5, 1.0, %v619_v2  ;;  %v628_v5 = vadd.f32 %v627_v3, %v582_v25  ;;  %v1436_v3 = vld [vmem:[#allocation6 + $0xdc] sm:$0xf] }
 0x16f   : > { %v629_v6 = vmul.f32 %v622_v4, %v2025_v1  ;;  %v1319_v4 = vor.u32 %v1437_v63, %v1318_v62 }
 0x170   : > { %v636_v7 = vrot.slane %v628_v5, 6 }
 0x171   : > { %v631_v8 = vrot.slane %v629_v6, 6  ;;  %870 = vmatpush.bf16.msrb.mxu1 %v1363_v43 }
 0x172   : > { %v638_v9 = vsel %vm633_vm8, 0.0, %v636_v7  ;;  %v1438_v7 = vld [vmem:[#allocation6 + $0xe8] sm:$0xf0] }
 0x173   : > { %v634_v10 = vsel %vm633_vm8, 1.0, %v631_v8  ;;  %v639_v11 = vmul.f32 %v638_v9, %v629_v6 }
 0x174   : > { %v641_v12 = vmul.f32 %v634_v10, %v629_v6  ;;  %v1326_v6 = vld [vmem:[#allocation6 + $0xe0] sm:$0xf] }
 0x175   : > { %v640_v13 = vadd.f32 %v639_v11, %v628_v5  ;;  %871 = vmatpush.bf16.msrb.mxu1 %v1351_v52  ;;  %v1320_v5 = vld [vmem:[#allocation6 + $0xe4] sm:$0xf0]  ;;  %v1327_v9 = vor.u32 %v1438_v7, %v1326_v6  ;;  %v1306_v10 = vld [vmem:[#allocation6 + $0xc0] sm:$0xf]  ;;  %v1434_v11 = vld [vmem:[#allocation6 + $0xc8] sm:$0xf0] }
 0x176   : > { %v643_v14 = vrot.slane %v641_v12, 4  ;;  %v1323_v8 = vor.u32 %v1436_v3, %v1320_v5 }
 0x177   : > { %v648_v15 = vrot.slane %v640_v13, 4 }
 0x178   : > { %v646_v17 = vsel %vm645_vm9, 1.0, %v643_v14  ;;  %v1308_v14 = vld [vmem:[#allocation6 + $0xcc] sm:$0xf0] }
 0x179   : > { %v650_v18 = vsel %vm645_vm9, 0.0, %v648_v15  ;;  %v653_v19 = vmul.f32 %v646_v17, %v641_v12  ;;  %872 = vmatpush.bf16.msrb.mxu1 %v1339_v61  ;;  %v1314_v15 = vld [vmem:[#allocation6 + $0xc8] sm:$0xf] }
 0x17a   : > { %v651_v20 = vmul.f32 %v650_v18, %v641_v12  ;;  %v1433_v12 = vld [vmem:[#allocation6 + $0xc4] sm:$0xf] }
 0x17b   : > { %v656_v21 = vmul.f32 %v1558_v16, %v653_v19  ;;  %v1435_v16 = vld [vmem:[#allocation6 + $0xd0] sm:$0xf0]  ;;  %v1311_v17 = vor.u32 %v1433_v12, %v1308_v14 }
 0x17c   : > { %v652_v22 = vadd.f32 %v651_v20, %v640_v13  ;;  %v1307_v13 = vor.u32 %v1434_v11, %v1306_v10  ;;  %v1315_v18 = vor.u32 %v1435_v16, %v1314_v15 }
 0x17d   : > { %873 = vmatpush.bf16.msrb.mxu1 %v1327_v9 }
 0x17e   : > { %v657_v23 = vadd.f32 %v656_v21, %v652_v22 }
 0x180   : > { %v659_v25 = vmul.f32 %v657_v23, %v2014_v24  ;;  %658 = vst [vmem:[#allocation2 - $0x7] sm:$0x80] %v657_v23  ;;  %v1354_v24 = vld [vmem:[#allocation6 + $0x120] sm:$0xf] }
 0x181   : > { %v1355_v38 = vor.u32 %v1446_v37, %v1354_v24  ;;  %874 = vmatpush.bf16.msrb.mxu1 %v1315_v18 }
 0x182   : > { %v2039_v26 = vadd.f32 %v659_v25, %v2009_v0  ;;  %v1445_v0 = vld [vmem:[#allocation6 + $0x124] sm:$0xf] }
 0x183   : > { %v1359_v42 = vor.u32 %v1445_v0, %v1356_v39  ;;  %844 = vmatpush.bf16.msra.mxu3 %v1355_v38 }
 0x184   : > { %v661_v27 = vmul.f32 %v2039_v26, %v2039_v26 }
 0x185   : > { %857 = vmatpush.bf16.msrb.mxu0 %v1359_v42 }
 0x186   : > { %662 = vadd.xlane.f32.xlu0 %v661_v27 }
 0x187   : > { %845 = vmatpush.bf16.msra.mxu3 %v1343_v47 }
 0x189   : > { %858 = vmatpush.bf16.msrb.mxu0 %v1347_v51 }
 0x18b   : > { %846 = vmatpush.bf16.msra.mxu3 %v1331_v56 }
 0x18d   : > { %859 = vmatpush.bf16.msrb.mxu0 %v1335_v60 }
 0x18f   : > { %847 = vmatpush.bf16.msra.mxu3 %v1319_v4 }
 0x191   : > { %860 = vmatpush.bf16.msrb.mxu0 %v1323_v8 }
 0x193   : > { %848 = vmatpush.bf16.msra.mxu3 %v1307_v13 }
 0x195   : > { %861 = vmatpush.bf16.msrb.mxu0 %v1311_v17 }
 0x1f9   : > { %v663_v19 = vpop.xlane.xlu0 %662 }
 0x1fa   : > { %v664_v20 = vmax.f32 %v663_v19, 1e-24 }
 0x1fc   : > { %1567 = vrsqrt.f32 %v664_v20  ;;  %vm671_vm11 = vweird.f32 %v664_v20 }
 0x202   : > { %v1568_v21 = vpop.eup %1567 }
 0x203   : > { %v666_v22 = vmul.f32 %v1568_v21, %v664_v20  ;;  %vm672_vm10 = vweird.f32 %v1568_v21 }
 0x204   : > { %vm673_vm12 = vmor %vm671_vm11, %vm672_vm10 }
 0x205   : > { %v667_v23 = vmul.f32 %v1568_v21, %v666_v22 }
 0x207   : > { %v668_v25 = vmul.f32 0.5, %v667_v23 }
 0x209   : > { %v669_v27 = vsub.f32 1.5, %v668_v25 }
 0x20b   : > { %v670_v28 = vmul.f32 %v1568_v21, %v669_v27 }
 0x20d   : > { %v674_v30 = vsel %vm673_vm12, %v1568_v21, %v670_v28 }
 0x20e   : > { %v675_v31 = vmul.f32 %v674_v30, %v2039_v26 }
 0x210   : > { %v678_v32 = vmul.f32 %v1559_v29, %v675_v31 }
 0x212   : > { %v679_v33 = vpack.c.bf16 %v678_v32, %v678_v32 }
 0x214   : > { %849 = vmatmul.bf16.vlgmr.msra.gmra.mxu3 %v679_v33  ;;  %862 = vmatmul.bf16.vlgmr.msrb.gmra.mxu0 %v679_v33 }
 0x215   : > { %875 = vmatmul.bf16.vlgmr.msrb.gmra.mxu1 %v679_v33 }
 0x291   : > { %v863_v34 = vpop.f32.mrf.mxu0 }
 0x292   : > { %v876_v35 = vpop.f32.mrf.mxu1  ;;  %v904_v47 = vrot.slane %v863_v34, 7 }
 0x293   : > { %v1400_v36 = vmul.f32 -1.442695, %v876_v35 }
 0x294   : > { %v906_v51 = vsel %vm621_vm5, 0.0, %v904_v47 }
 0x295   : > { %1569 = vpow2.f32 %v1400_v36 }
 0x297   : > { %v2044_v24 = vpop.f32.mrf.mxu3 }
 0x299   : > { %v865_v37 = vpop.f32.mrf.mxu0 }
 0x29a   : > { %v878_v0 = vpop.f32.mrf.mxu1 }
 0x29b   : > { %v1570_v38 = vpop.eup %1569 }
 0x29c   : > { %v883_v39 = vadd.f32 1.0, %v1570_v38 }
 0x29e   : > { %1571 = vrcp.f32 %v883_v39  ;;  %v895_v44 = vand.u32 2147483648, %v883_v39  ;;  %v893_v46 = vand.u32 2147483647, %v883_v39  ;;  %vm889_vm14 = vweird.f32 %v883_v39 }
 0x29f   : > { %v852_v40 = vpop.f32.mrf.mxu3 }
 0x2a0   : > { %v896_v49 = vor.u32 1.1754944e-38, %v895_v44  ;;  %vm894_vm0 = vcmp.eq.f32.partialorder %v893_v46, 8.507059e+37 }
 0x2a4   : > { %v1572_v41 = vpop.eup %1571 }
 0x2a5   : > { %v885_v42 = vmul.f32 %v1572_v41, %v883_v39  ;;  %vm890_vm13 = vweird.f32 %v1572_v41 }
 0x2a6   : > { %vm891_vm15 = vmor %vm889_vm14, %vm890_vm13 }
 0x2a7   : > { %v886_v43 = vsub.f32 1.0, %v885_v42 }
 0x2a9   : > { %v887_v45 = vmul.f32 %v1572_v41, %v886_v43 }
 0x2ab   : > { %v888_v48 = vadd.f32 %v1572_v41, %v887_v45 }
 0x2ad   : > { %v892_v50 = vsel %vm891_vm15, %v1572_v41, %v888_v48 }
 0x2ae   : > { %v897_v52 = vsel %vm894_vm0, %v896_v49, %v892_v50 }
 0x2af   : > { %v900_v53 = vrot.slane %v897_v52, 7  ;;  %v907_v54 = vmul.f32 %v906_v51, %v897_v52  ;;  %v943_v55 = vrot.slane %v897_v52, 6 }
 0x2b1   : > { %v902_v56 = vsel %vm621_vm5, 1.0, %v900_v53  ;;  %v908_v57 = vadd.f32 %v907_v54, %v863_v34  ;;  %v945_v58 = vsel %vm621_vm5, %v619_v2, %v943_v55 }
 0x2b2   : > { %v909_v59 = vmul.f32 %v902_v56, %v897_v52  ;;  %946 = vst [vmem:[%s366_s10] sm:$0x3] %v945_v58 }
 0x2b3   : > { %v915_v60 = vrot.slane %v908_v57, 6 }
 0x2b4   : > { %1720 = shalt.err (!%p1717_p13)
}
 0x2b5   : > { %1470 = dma.vmem_to_hbm [thread:$0]  (%p1958_p2), %s988_s12, 32, %s990_s13, %s2062_s27   ;;  %v911_v1 = vrot.slane %v909_v59, 6  ;;  %v917_v2 = vsel %vm633_vm8, 0.0, %v915_v60  ;;  %v1560_v6 = vld [vmem:[#allocation2 + $0x1] ss:$0 sm:$0xff] }
 0x2b6   : > { %v918_v62 = vmul.f32 %v917_v2, %v909_v59  ;;  %s1404_s17 = sshll.u32 %s1835_s24, 3  ;;  %s359_s29 = scalar_lea.vmem [#allocation11], %s1200_s1 }
 0x2b7   : > { %v913_v61 = vsel %vm633_vm8, 1.0, %v911_v1  ;;  %s971_s18 = scalar_lea.hbm %s2147_s4, %s1404_s17  ;;  %s973_s8 = sshll.u32 %s359_s29, 4  ;;  %s974_s8 = int_to_ptr.vmem [resolvable:$true] %s973_s8 }
 0x2b8   : > { %v920_v63 = vmul.f32 %v913_v61, %v909_v59  ;;  %v919_v3 = vadd.f32 %v918_v62, %v908_v57  ;;  %s975_s9 = sshll.u32 %s971_s18, 4  ;;  %s999_s13 = scalar_lea.hbm %s2149_s6, %s1405_s7  ;;  %s976_s9 = int_to_ptr.hbm [resolvable:$true] %s975_s9 }
 0x2b9   : > { %s1003_s14 = sshll.u32 %s999_s13, 4  ;;  %s373_s15 = scalar_lea.vmem [#allocation14], %s2001_s21  ;;  %s1004_s14 = int_to_ptr.hbm [resolvable:$true] %s1003_s14 }
 0x2ba   : > { %v922_v4 = vrot.slane %v920_v63, 4  ;;  %v926_v5 = vrot.slane %v919_v3, 4  ;;  %s2093_s16 = sshll.u32 %s373_s15, 4  ;;  %s950_s1 = scalar_lea.sflag [#allocation5], %s1986_s20  ;;  %s1002_s16 = int_to_ptr.vmem [resolvable:$true] %s2093_s16 }
 0x2bb   : > { %s1735_s28 = sshra.s32 %s976_s9, 4  ;;  %s1741_s7 = scalar_lea.hbm %s2147_s4, 16  ;;  %s1736_s28 = int_to_ptr.hbm [resolvable:$true] %s1735_s28 }
 0x2bc   : > { %v924_v7 = vsel %vm645_vm9, 1.0, %v922_v4  ;;  %v928_v8 = vsel %vm645_vm9, 0.0, %v926_v5  ;;  %s1737_s19 = scalar_lea.hbm %s1736_s28, 8  ;;  %p1742_p8 = scmp.lt.s32.totalorder %s1736_s28, %s2147_s4 }
 0x2bd   : > { %v931_v9 = vmul.f32 %v924_v7, %v920_v63  ;;  %v929_v10 = vmul.f32 %v928_v8, %v920_v63  ;;  %p1738_p0 = scmp.ne.s32.totalorder %s1736_s28, %s1737_s19  ;;  %p1743_p1 = scmp.lt.s32.totalorder %s1741_s7, %s1737_s19 }
 0x2bf   : > { %v934_v11 = vmul.f32 %v1560_v6, %v931_v9  ;;  %v930_v12 = vadd.f32 %v929_v10, %v919_v3  ;;  %p1739_p4 = pnand %p1738_p0, %p1958_p2  ;;  %p1744_p3 = por %p1743_p1, %p1742_p8 }
 0x2c1   : > { %v935_v13 = vadd.f32 %v934_v11, %v930_v12  ;;  %p1740_p7 = pneg %p1739_p4 }
 0x2c3   : > { %936 = vst [vmem:[#allocation2 - $0x6] sm:$0x80] %v935_v13  ;;  %v937_v14 = vmul.f32 %v935_v13, %v2044_v24  ;;  %p1745_p9 = pnand %p1744_p3, %p1740_p7 }
 0x2c5   : > { %v938_v15 = vadd.f32 %v937_v14, %v2039_v26 }
 0x2c7   : > { %939 = vst [vmem:[%s359_s29] sm:$0xff] %v938_v15 }
 0x2c8   : > { %1748 = shalt.err (!%p1745_p9)
}
 0x2c9   : > { %1469 = dma.vmem_to_hbm [thread:$0]  (%p1958_p2), %s974_s8, 128, %s976_s9, %s950_s1  }
 0x2ca   : > { %v947_v26 = vld [vmem:[#allocation2] sm:$0x3]  ;;  %s1763_s20 = sshra.s32 %s1004_s14, 4  ;;  %s1769_s18 = scalar_lea.hbm %s2149_s6, 4  ;;  %s1764_s20 = int_to_ptr.hbm [resolvable:$true] %s1763_s20 }
 0x2cb   : > { %948 = vst [vmem:[%s373_s15] sm:$0x3] %v947_v26  ;;  %s1765_s21 = scalar_lea.hbm %s1764_s20, 2  ;;  %p1770_p13 = scmp.lt.s32.totalorder %s1764_s20, %s2149_s6 }
 0x2cc   : > { %p1766_p10 = scmp.ne.s32.totalorder %s1764_s20, %s1765_s21  ;;  %p1771_p0 = scmp.lt.s32.totalorder %s1769_s18, %s1765_s21 }
 0x2ce   : > { %p1767_p11 = pnand %p1766_p10, %p1958_p2  ;;  %p1772_p4 = por %p1771_p0, %p1770_p13 }
 0x2d0   : > { %p1768_p12 = pneg %p1767_p11 }
 0x2d2   : > { %p1773_p7 = pnand %p1772_p4, %p1768_p12 }
 0x2d4   : > { %1776 = shalt.err (!%p1773_p7)
}
 0x2d5   : > { %1471 = dma.vmem_to_hbm [thread:$0]  (%p1958_p2), %s1002_s16, 32, %s1004_s14, %s2062_s27  }
 0x2d6 PF: > { %s2174_s8 = sld [smem:[#allocation20_spill]]  ;;  %p1490_p8 = pnand %p1194_p6, %p1967_p5 }
 0x2d7   : > { %s2176_s12 = sld [smem:[#allocation22_spill]] }
 0x2d8   : > { %p1491_p1 = pneg %p1490_p8 }
 0x2dc   : > { %s1015_s13 = sand.u32 1, %s2174_s8  }
 0x2dd   : > { %s1016_s15 = scalar_lea.sflag [#allocation5], %s1015_s13 }
 0x2de   : > { %1814 = dma.done.wait (%p1491_p1), %s1016_s15, 128  }
 0x2df   : > { %1816 = vsyncadd (%p1491_p1), %s1016_s15, 4294967168  ;;  %s2177_s1 = sadd.s32 4294967294, %s2176_s12  }
 0x2e0   : > { %s1025_s28 = sand.u32 1, %s2177_s1  }
 0x2e1   : > { %s1026_s19 = scalar_lea.sflag [#allocation13], %s1025_s28 }
 0x2e2   : > { %1818 = dma.done.wait (%p1491_p1), %s1026_s19, 64  }
 0x2e3   : > { %1820 = vsyncadd (%p1491_p1), %s1026_s19, 4294967232  ;;  %s30_s26 = sadd.s32 1, %s2176_s12   ;;  %s2178_s30 = sld [smem:[#allocation21_spill]] }
 0x2e4   : > { %p27_p2 = scmp.ge.s32.totalorder %s30_s26, 4   ;;  %s2179_s23 = sld [smem:[#allocation24_spill]] }
 0x2e5   : > { %s2180_s27 = sld [smem:[#allocation23_spill]]  ;;  %s2181_s21 = smov %s1827_s22 }
 0x2e6   : > { %s2183_s24 = smov %s1839_s25 }
 0x2e7   :  { %29 = sbr.rel (!%p27_p2) target bundleno = 14 (0xe), region = 143 }
 0x2e9   : > { %s2182_s22 = smov %s2178_s30 }
 0x2eb   : > { %s2184_s25 = smov %s2180_s27 }
 0x2ec   :  { %1042 = vsyncpa [#allocation4], 1 }
 0x2ed   :  { %1044 = vsyncpa [#allocation4 + $0x1], 1 }
 0x2ee   :  { %1045 = vsyncpa [#allocation7], 1 }
 0x2ef   :  { %1046 = vsyncpa [#allocation10], 1 }
 0x2f0   :  { %1048 = vsyncpa [#allocation10 + $0x1], 1 }
 0x2f1   :  { %1049 = vsyncpa [#allocation5], 1 }
 0x2f2   :  { %1051 = vsyncpa [#allocation5 + $0x1], 1 }
 0x2f3   :  { %1052 = vsyncpa [#allocation13], 1 }
 0x2f4   :  { %1054 = vsyncpa [#allocation13 + $0x1], 1 }

</bundles_post_ra>
